<compile_context>
chip_gen: v5e
topology: v5e:2x2
jax: 0.10.0
libtpu: 0.0.40
codegen_flags: <defaults>
</compile_context>

<pallas_src>
import functools

import jax
import jax.numpy as jnp
from jax.experimental import pallas as pl
from jax.experimental.pallas import tpu as pltpu


def _round_up(x, m):
    return ((x + m - 1) // m) * m


# --------------------------------------------------------------------------
# Kernel: one batch tile, all params resident.  3 matmuls + 2 ReLUs total
# for BOTH Q-heads (fused / block-diagonal, lane-aligned weights).
# --------------------------------------------------------------------------
def fused_critic_kernel(s_ref, l1_ref, l2_ref, l3_ref, out_ref):
    x = s_ref[...]                       # (TILE_B, obs_p)
    l1 = l1_ref[...]                     # (obs_p + 1, h2_p)   rows: [W1 ; b1]
    l2 = l2_ref[...]                     # (h2_p + 1, h2_p)    rows: [W2 ; b2]
    l3 = l3_ref[...]                     # (h2_p + 1, out_p)   rows: [W3 ; b3]

    obs_p = x.shape[1]                   # multiple of 8
    h2_p = l2.shape[1]                   # multiple of 128

    w1, b1 = l1[:obs_p, :], l1[obs_p:obs_p + 1, :]
    w2, b2 = l2[:h2_p, :], l2[h2_p:h2_p + 1, :]
    w3, b3 = l3[:h2_p, :], l3[h2_p:h2_p + 1, :]

    a1 = jnp.maximum(
        jnp.dot(x, w1, preferred_element_type=jnp.float32) + b1, 0.0)
    a2 = jnp.maximum(
        jnp.dot(a1, w2, preferred_element_type=jnp.float32) + b2, 0.0)
    out_ref[...] = jnp.dot(a2, w3, preferred_element_type=jnp.float32) + b3


# --------------------------------------------------------------------------
# Wrapper: pack + pad params once, grid over batch, slice q1/q2 out of the
# single lane-dense output slab.
# --------------------------------------------------------------------------
def _pack_params(q1_params, q2_params, obs_p, h2_p, out_p):
    w1a, b1a, w2a, b2a, w3a, b3a = q1_params
    w1b, b1b, w2b, b2b, w3b, b3b = q2_params
    obs, hidden = w1a.shape
    num_actions = w3a.shape[1]
    h2 = 2 * hidden
    a2 = 2 * num_actions

    # Layer 1: concat along output features, zero-pad to (obs_p, h2_p).
    w1 = jnp.pad(jnp.concatenate([w1a, w1b], axis=1),
                 ((0, obs_p - obs), (0, h2_p - h2)))
    b1 = jnp.pad(jnp.concatenate([b1a, b1b], axis=1), ((0, 0), (0, h2_p - h2)))

    # Layer 2: block-diagonal, zero-pad to (h2_p, h2_p).
    zh = jnp.zeros((hidden, hidden), jnp.float32)
    w2 = jnp.pad(jnp.block([[w2a, zh], [zh, w2b]]),
                 ((0, h2_p - h2), (0, h2_p - h2)))
    b2 = jnp.pad(jnp.concatenate([b2a, b2b], axis=1), ((0, 0), (0, h2_p - h2)))

    # Layer 3: block-diagonal, zero-pad to (h2_p, out_p) -> lane-dense output.
    za = jnp.zeros((hidden, num_actions), jnp.float32)
    w3 = jnp.pad(jnp.block([[w3a, za], [za, w3b]]),
                 ((0, h2_p - h2), (0, out_p - a2)))
    b3 = jnp.pad(jnp.concatenate([b3a, b3b], axis=1), ((0, 0), (0, out_p - a2)))

    # Pack [W ; b] per layer (bias = last row) -> one slab per layer.
    l1 = jnp.concatenate([w1, b1], axis=0)     # (obs_p + 1, h2_p)
    l2 = jnp.concatenate([w2, b2], axis=0)     # (h2_p + 1, h2_p)
    l3 = jnp.concatenate([w3, b3], axis=0)     # (h2_p + 1, out_p)
    return l1, l2, l3


@functools.partial(jax.jit, static_argnames=("tile_b",))
def base_critic_forward(state, q1_params, q2_params, *, tile_b=512):
    """state: (B, obs_dim) f32.  Returns (q1, q2), each (B, num_actions)."""
    B, obs = state.shape
    hidden = q1_params[0].shape[1]
    num_actions = q1_params[-1].shape[-1]

    obs_p = _round_up(obs, 8)                          # sublane-aligned K
    h2_p = _round_up(2 * hidden, 128)                  # lane-aligned hidden
    out_p = _round_up(max(2 * num_actions, 128), 128)  # lane-dense output

    l1, l2, l3 = _pack_params(q1_params, q2_params, obs_p, h2_p, out_p)

    # Batch tile: multiple of 8 sublanes; tiny batches don't pad up to 512.
    tile_b = min(tile_b, _round_up(B, 8))
    b_pad = _round_up(B, tile_b)
    if b_pad != B or obs_p != obs:
        state = jnp.pad(state, ((0, b_pad - B), (0, obs_p - obs)))

    grid = (b_pad // tile_b,)
    flops = 2 * b_pad * (obs_p * h2_p + h2_p * h2_p + h2_p * out_p)
    bytes_accessed = 4 * (b_pad * obs_p + l1.size + l2.size + l3.size
                          + b_pad * out_p)

    # Raise the scoped-VMEM limit only when large shapes actually need it
    # (state/out tiles are double-buffered; slabs counted twice for safety).
    vmem_need = 4 * (2 * tile_b * (obs_p + out_p)
                     + 2 * (l1.size + l2.size + l3.size))
    cp_kwargs = dict(dimension_semantics=("parallel",))
    if vmem_need > (24 << 20):
        cp_kwargs["vmem_limit_bytes"] = min(int(1.5 * vmem_need), 100 << 20)

    out = pl.pallas_call(
        fused_critic_kernel,
        out_shape=jax.ShapeDtypeStruct((b_pad, out_p), jnp.float32),
        grid_spec=pltpu.PrefetchScalarGridSpec(
            num_scalar_prefetch=0,
            grid=grid,
            in_specs=[
                pl.BlockSpec((tile_b, obs_p), lambda i: (i, 0)),  # state tile
                pl.BlockSpec(l1.shape, lambda i: (0, 0)),         # resident
                pl.BlockSpec(l2.shape, lambda i: (0, 0)),         # resident
                pl.BlockSpec(l3.shape, lambda i: (0, 0)),         # resident
            ],
            out_specs=pl.BlockSpec((tile_b, out_p), lambda i: (i, 0)),
        ),
        compiler_params=pltpu.CompilerParams(**cp_kwargs),
        cost_estimate=pl.CostEstimate(
            flops=flops, transcendentals=0, bytes_accessed=bytes_accessed),
    )(state, l1, l2, l3)

    q1 = out[:B, :num_actions]
    q2 = out[:B, num_actions:2 * num_actions]
    return q1, q2


# --------------------------------------------------------------------------
# Param init + pure-JAX reference (unfused, matches PyTorch semantics).
# --------------------------------------------------------------------------
def init_q_params(key, obs_dim, hidden, num_actions):
    """PyTorch-style uniform fan-in init; weights stored (in, out)."""
    ks = jax.random.split(key, 6)

    def lin(kw, kb, fan_in, fan_out):
        bound = 1.0 / jnp.sqrt(jnp.float32(fan_in))
        w = jax.random.uniform(kw, (fan_in, fan_out), jnp.float32, -bound, bound)
        b = jax.random.uniform(kb, (1, fan_out), jnp.float32, -bound, bound)
        return w, b

    w1, b1 = lin(ks[0], ks[1], obs_dim, hidden)
    w2, b2 = lin(ks[2], ks[3], hidden, hidden)
    w3, b3 = lin(ks[4], ks[5], hidden, num_actions)
    return (w1, b1, w2, b2, w3, b3)


def _mlp_ref(x, w1, b1, w2, b2, w3, b3):
    h1 = jnp.maximum(x @ w1 + b1, 0.0)
    h2 = jnp.maximum(h1 @ w2 + b2, 0.0)
    return h2 @ w3 + b3


def reference_forward(state, q1_params, q2_params):
    return (_mlp_ref(state, *q1_params), _mlp_ref(state, *q2_params))


if __name__ == "__main__":
    B, OBS, HIDDEN, NUM_ACTIONS = 8, 16, 32, 4

    root = jax.random.PRNGKey(0)
    k_state, k_q1, k_q2 = jax.random.split(root, 3)

    state = jax.random.normal(k_state, (B, OBS), jnp.float32)
    q1_params = init_q_params(k_q1, OBS, HIDDEN, NUM_ACTIONS)
    q2_params = init_q_params(k_q2, OBS, HIDDEN, NUM_ACTIONS)

    q1, q2 = base_critic_forward(state, q1_params, q2_params)
    jax.block_until_ready((q1, q2))

    r1, r2 = reference_forward(state, q1_params, q2_params)
    assert q1.shape == (B, NUM_ACTIONS) and q2.shape == (B, NUM_ACTIONS)
    assert jnp.allclose(q1, r1, atol=1e-5, rtol=1e-5)
    assert jnp.allclose(q2, r2, atol=1e-5, rtol=1e-5)

    print("KERNEL_OK")
</pallas_src>

<mosaic_0001>
module attributes {stable_mosaic.version = 11 : i64} {
  func.func @fused_critic_kernel(%arg0: i32, %arg1: memref<8x16xf32, #tpu.memory_space<vmem>>, %arg2: memref<17x128xf32, #tpu.memory_space<vmem>>, %arg3: memref<129x128xf32, #tpu.memory_space<vmem>>, %arg4: memref<129x128xf32, #tpu.memory_space<vmem>>, %arg5: memref<8x128xf32, #tpu.memory_space<vmem>>) attributes {dimension_semantics = [#tpu.dimension_semantics<parallel>], iteration_bounds = array<i64: 1>, scalar_prefetch = 0 : i64, scratch_operands = 0 : i64, tpu.core_type = #tpu.core_type<tc>, window_params = [{transform_indices = @transform_0, window_bounds = array<i64: 8, 16>}, {pipeline_mode = #tpu.pipeline_mode<synchronous>, transform_indices = @transform_1, window_bounds = array<i64: 17, 128>}, {pipeline_mode = #tpu.pipeline_mode<synchronous>, transform_indices = @transform_2, window_bounds = array<i64: 129, 128>}, {pipeline_mode = #tpu.pipeline_mode<synchronous>, transform_indices = @transform_3, window_bounds = array<i64: 129, 128>}, {transform_indices = @transform_4, window_bounds = array<i64: 8, 128>}]} {
    %c0 = arith.constant 0 : index
    %c0_0 = arith.constant 0 : index
    %0 = vector.load %arg1[%c0, %c0_0] : memref<8x16xf32, #tpu.memory_space<vmem>>, vector<8x16xf32>
    %c0_1 = arith.constant 0 : index
    %c0_2 = arith.constant 0 : index
    %1 = vector.load %arg2[%c0_1, %c0_2] : memref<17x128xf32, #tpu.memory_space<vmem>>, vector<17x128xf32>
    %c0_3 = arith.constant 0 : index
    %c0_4 = arith.constant 0 : index
    %2 = vector.load %arg3[%c0_3, %c0_4] : memref<129x128xf32, #tpu.memory_space<vmem>>, vector<129x128xf32>
    %c0_5 = arith.constant 0 : index
    %c0_6 = arith.constant 0 : index
    %3 = vector.load %arg4[%c0_5, %c0_6] : memref<129x128xf32, #tpu.memory_space<vmem>>, vector<129x128xf32>
    %4 = vector.extract_strided_slice %1 {offsets = [0, 0], sizes = [16, 128], strides = [1, 1]} : vector<17x128xf32> to vector<16x128xf32>
    %5 = vector.extract_strided_slice %1 {offsets = [16, 0], sizes = [1, 128], strides = [1, 1]} : vector<17x128xf32> to vector<1x128xf32>
    %6 = vector.extract_strided_slice %2 {offsets = [0, 0], sizes = [128, 128], strides = [1, 1]} : vector<129x128xf32> to vector<128x128xf32>
    %7 = vector.extract_strided_slice %2 {offsets = [128, 0], sizes = [1, 128], strides = [1, 1]} : vector<129x128xf32> to vector<1x128xf32>
    %8 = vector.extract_strided_slice %3 {offsets = [0, 0], sizes = [128, 128], strides = [1, 1]} : vector<129x128xf32> to vector<128x128xf32>
    %9 = vector.extract_strided_slice %3 {offsets = [128, 0], sizes = [1, 128], strides = [1, 1]} : vector<129x128xf32> to vector<1x128xf32>
    %cst = arith.constant dense<0.000000e+00> : vector<8x128xf32>
    %10 = tpu.matmul %0, %4, %cst {dimension_numbers = #tpu.dot_dimension_numbers<[1], [0], [0], [1], [0, 0, 1, 1], [], []>} : vector<8x16xf32>, vector<16x128xf32>, vector<8x128xf32> -> vector<8x128xf32>
    %11 = vector.broadcast %5 : vector<1x128xf32> to vector<8x128xf32>
    %12 = arith.addf %10, %11 : vector<8x128xf32>
    %cst_7 = arith.constant 0.000000e+00 : f32
    %13 = vector.broadcast %cst_7 : f32 to vector<8x128xf32>
    %14 = arith.maximumf %12, %13 : vector<8x128xf32>
    %cst_8 = arith.constant dense<0.000000e+00> : vector<8x128xf32>
    %15 = tpu.matmul %14, %6, %cst_8 {dimension_numbers = #tpu.dot_dimension_numbers<[1], [0], [0], [1], [0, 0, 1, 1], [], []>} : vector<8x128xf32>, vector<128x128xf32>, vector<8x128xf32> -> vector<8x128xf32>
    %16 = vector.broadcast %7 : vector<1x128xf32> to vector<8x128xf32>
    %17 = arith.addf %15, %16 : vector<8x128xf32>
    %cst_9 = arith.constant 0.000000e+00 : f32
    %18 = vector.broadcast %cst_9 : f32 to vector<8x128xf32>
    %19 = arith.maximumf %17, %18 : vector<8x128xf32>
    %cst_10 = arith.constant dense<0.000000e+00> : vector<8x128xf32>
    %20 = tpu.matmul %19, %8, %cst_10 {dimension_numbers = #tpu.dot_dimension_numbers<[1], [0], [0], [1], [0, 0, 1, 1], [], []>} : vector<8x128xf32>, vector<128x128xf32>, vector<8x128xf32> -> vector<8x128xf32>
    %21 = vector.broadcast %9 : vector<1x128xf32> to vector<8x128xf32>
    %22 = arith.addf %20, %21 : vector<8x128xf32>
    %c0_11 = arith.constant 0 : index
    %c0_12 = arith.constant 0 : index
    %23 = vector.load %arg5[%c0_11, %c0_12] : memref<8x128xf32, #tpu.memory_space<vmem>>, vector<8x128xf32>
    tpu.vector_store %arg5[%c0_11, %c0_12], %22 {strides = array<i32>} : memref<8x128xf32, #tpu.memory_space<vmem>>, vector<8x128xf32>,
    return
  }
  func.func @transform_0(%arg0: i32) -> (i32, i32) {
    %c0_i32 = arith.constant 0 : i32
    %c0_i32_0 = arith.constant 0 : i32
    return %arg0, %c0_i32 : i32, i32
  }
  func.func @transform_1(%arg0: i32) -> (i32, i32) {
    %c0_i32 = arith.constant 0 : i32
    %c0_i32_0 = arith.constant 0 : i32
    %c0_i32_1 = arith.constant 0 : i32
    return %c0_i32, %c0_i32_0 : i32, i32
  }
  func.func @transform_2(%arg0: i32) -> (i32, i32) {
    %c0_i32 = arith.constant 0 : i32
    %c0_i32_0 = arith.constant 0 : i32
    %c0_i32_1 = arith.constant 0 : i32
    return %c0_i32, %c0_i32_0 : i32, i32
  }
  func.func @transform_3(%arg0: i32) -> (i32, i32) {
    %c0_i32 = arith.constant 0 : i32
    %c0_i32_0 = arith.constant 0 : i32
    %c0_i32_1 = arith.constant 0 : i32
    return %c0_i32, %c0_i32_0 : i32, i32
  }
  func.func @transform_4(%arg0: i32) -> (i32, i32) {
    %c0_i32 = arith.constant 0 : i32
    %c0_i32_0 = arith.constant 0 : i32
    return %arg0, %c0_i32 : i32, i32
  }
}

</mosaic_0001>

<bundles_post_ra>
// kernel: base_critic_forward.1
= control target key start
LH: loop header
LB: loop body
LE: loop exit
PB: predicated region body
PF: predicated region fallthrough
CT: control target
= control target key end

     0   :  { %vm56_vm0 = vcmask 130048   ;;  %s275_s1 = inlined_call_operand.vmem [shape: f32[17,128], index: 1, kind: input, shape index: {}]   ;;  %s276_s0 = inlined_call_operand.vmem [shape: f32[8,16], index: 0, kind: input, shape index: {}]   ;;  %s277_s2 = inlined_call_operand.vmem [shape: f32[129,128], index: 2, kind: input, shape index: {}]   ;;  %s278_s3 = inlined_call_operand.vmem [shape: f32[129,128], index: 3, kind: input, shape index: {}]   ;;  %s279_s4 = inlined_call_operand.vmem [shape: f32[8,128], index: 4, kind: output, shape index: {}]  }
   0x1   :  { %v19_v0 = vld [vmem:[%s275_s1 + $0x8] sm:$0xff]  ;;  %v18_v1 = vld [vmem:[%s275_s1] sm:$0xff]  ;;  %v36_v3 = vld [vmem:[%s277_s2 + $0x78] sm:$0xff] }
   0x2   :  { %74 = vmatpush.msra.mxu0 %v19_v0  ;;  %v17_v2 = vld [vmem:[%s276_s0] sm:$0xff]  ;;  %v35_v4 = vld [vmem:[%s277_s2 + $0x70] sm:$0xff]  ;;  %82 = vmatpush.msra.mxu1 %v36_v3  ;;  %v34_v5 = vld [vmem:[%s277_s2 + $0x68] sm:$0xff] }
   0x3   :  { %v33_v6 = vld [vmem:[%s277_s2 + $0x60] sm:$0xff]  ;;  %v32_v7 = vld [vmem:[%s277_s2 + $0x58] sm:$0xff]  ;;  %v31_v8 = vld [vmem:[%s277_s2 + $0x50] sm:$0xff] }
   0x4   :  { %75 = vmatpush.msra.mxu0 %v18_v1  ;;  %83 = vmatpush.msra.mxu1 %v35_v4  ;;  %v30_v9 = vld [vmem:[%s277_s2 + $0x48] sm:$0xff]  ;;  %v29_v10 = vld [vmem:[%s277_s2 + $0x40] sm:$0xff]  ;;  %v28_v11 = vld [vmem:[%s277_s2 + $0x38] sm:$0xff] }
   0x5   :  { %129 = vmatmul.msk.f32.vlgmr.msra.gmra.mxu0 %vm56_vm0, %v17_v2  ;;  %v27_v12 = vld [vmem:[%s277_s2 + $0x30] sm:$0xff]  ;;  %v26_v13 = vld [vmem:[%s277_s2 + $0x28] sm:$0xff]  ;;  %v25_v14 = vld [vmem:[%s277_s2 + $0x20] sm:$0xff] }
   0x6   :  { %84 = vmatpush.msra.mxu1 %v34_v5  ;;  %v24_v15 = vld [vmem:[%s277_s2 + $0x18] sm:$0xff]  ;;  %v23_v16 = vld [vmem:[%s277_s2 + $0x10] sm:$0xff]  ;;  %v22_v17 = vld [vmem:[%s277_s2 + $0x8] sm:$0xff] }
   0x7   :  { %v21_v18 = vld [vmem:[%s277_s2] sm:$0xff]  ;;  %v53_v19 = vld [vmem:[%s278_s3 + $0x78] sm:$0xff]  ;;  %v52_v20 = vld [vmem:[%s278_s3 + $0x70] sm:$0xff] }
   0x8   :  { %85 = vmatpush.msra.mxu1 %v33_v6  ;;  %104 = vmatpush.msra.mxu2 %v53_v19  ;;  %v51_v21 = vld [vmem:[%s278_s3 + $0x68] sm:$0xff]  ;;  %v50_v22 = vld [vmem:[%s278_s3 + $0x60] sm:$0xff]  ;;  %v49_v23 = vld [vmem:[%s278_s3 + $0x58] sm:$0xff] }
   0x9   :  { %v48_v24 = vld [vmem:[%s278_s3 + $0x50] sm:$0xff]  ;;  %v47_v25 = vld [vmem:[%s278_s3 + $0x48] sm:$0xff]  ;;  %v46_v26 = vld [vmem:[%s278_s3 + $0x40] sm:$0xff] }
   0xa   :  { %86 = vmatpush.msra.mxu1 %v32_v7  ;;  %105 = vmatpush.msra.mxu2 %v52_v20  ;;  %v45_v27 = vld [vmem:[%s278_s3 + $0x38] sm:$0xff]  ;;  %v44_v28 = vld [vmem:[%s278_s3 + $0x30] sm:$0xff]  ;;  %v43_v29 = vld [vmem:[%s278_s3 + $0x28] sm:$0xff] }
   0xb   :  { %v42_v30 = vld [vmem:[%s278_s3 + $0x20] sm:$0xff]  ;;  %v41_v31 = vld [vmem:[%s278_s3 + $0x18] sm:$0xff]  ;;  %v130_v32 = vld [vmem:[%s275_s1 + $0x10] ss:$0 sm:$0xff] }
   0xc   :  { %87 = vmatpush.msra.mxu1 %v31_v8  ;;  %106 = vmatpush.msra.mxu2 %v51_v21  ;;  %v40_v36 = vld [vmem:[%s278_s3 + $0x10] sm:$0xff]  ;;  %v39_v37 = vld [vmem:[%s278_s3 + $0x8] sm:$0xff]  ;;  %v38_v38 = vld [vmem:[%s278_s3] sm:$0xff] }
   0xd   :  { %v131_v39 = vld [vmem:[%s277_s2 + $0x80] ss:$0 sm:$0xff] }
   0xe   :  { %88 = vmatpush.msra.mxu1 %v30_v9  ;;  %107 = vmatpush.msra.mxu2 %v50_v22  ;;  %v132_v43 = vld [vmem:[%s278_s3 + $0x80] ss:$0 sm:$0xff] }
  0x10   :  { %89 = vmatpush.msra.mxu1 %v29_v10  ;;  %108 = vmatpush.msra.mxu2 %v49_v23 }
  0x12   :  { %90 = vmatpush.msra.mxu1 %v28_v11  ;;  %109 = vmatpush.msra.mxu2 %v48_v24 }
  0x14   :  { %91 = vmatpush.msra.mxu1 %v27_v12  ;;  %110 = vmatpush.msra.mxu2 %v47_v25 }
  0x16   :  { %92 = vmatpush.msra.mxu1 %v26_v13  ;;  %111 = vmatpush.msra.mxu2 %v46_v26 }
  0x18   :  { %93 = vmatpush.msra.mxu1 %v25_v14  ;;  %112 = vmatpush.msra.mxu2 %v45_v27 }
  0x1a   :  { %94 = vmatpush.msra.mxu1 %v24_v15  ;;  %113 = vmatpush.msra.mxu2 %v44_v28 }
  0x1c   :  { %95 = vmatpush.msra.mxu1 %v23_v16  ;;  %114 = vmatpush.msra.mxu2 %v43_v29 }
  0x1e   :  { %96 = vmatpush.msra.mxu1 %v22_v17  ;;  %115 = vmatpush.msra.mxu2 %v42_v30 }
  0x20   :  { %97 = vmatpush.msra.mxu1 %v21_v18  ;;  %116 = vmatpush.msra.mxu2 %v41_v31 }
  0x22   :  { %117 = vmatpush.msra.mxu2 %v40_v36 }
  0x24   :  { %118 = vmatpush.msra.mxu2 %v39_v37 }
  0x26   :  { %119 = vmatpush.msra.mxu2 %v38_v38 }
  0x82   :  { %v77_v33 = vpop.f32.mrf.mxu0 }
  0x83   :  { %v78_v34 = vadd.f32 %v130_v32, %v77_v33 }
  0x85   :  { %v80_v35 = vmax.f32 %v78_v34, 0.0 }
  0x87   :  { %98 = vmatmul.f32.vlgmr.msra.gmra.mxu1 %v80_v35 }
 0x104   :  { %v99_v40 = vpop.f32.mrf.mxu1 }
 0x105   :  { %v100_v41 = vadd.f32 %v131_v39, %v99_v40 }
 0x107   :  { %v102_v42 = vmax.f32 %v100_v41, 0.0 }
 0x109   :  { %120 = vmatmul.f32.vlgmr.msra.gmra.mxu2 %v102_v42 }
 0x18c   :  { %v121_v44 = vpop.f32.mrf.mxu2 }
 0x18d   :  { %v122_v45 = vadd.f32 %v132_v43, %v121_v44 }
 0x18f   :  { %124 = vst [vmem:[%s279_s4] sm:$0xff] %v122_v45 }

</bundles_post_ra>
